<compile_context>
chip_gen: v6e
topology: v6e:2x2x1
jax: 0.10.0
libtpu: 0.0.40
codegen_flags: <defaults>
</compile_context>

<pallas_src>
import functools

import jax
import jax.numpy as jnp
import numpy as np
from jax.experimental import pallas as pl
from jax.experimental.pallas import tpu as pltpu

D_IN = 270        # input / hidden feature dim of the PyTorch module
D_LAT = 54        # latent dim
D_IN_PAD = 384    # 3 * 128 lanes
D_LAT_PAD = 64    # mu / log-sigma each padded to 64 lanes -> fused 128-wide head


def _round_up(n, m):
    return ((n + m - 1) // m) * m


def _vae_encoder_kernel(x_ref, w1_ref, b1_ref, w23_ref, b23_ref, noise_ref, out_ref):
    # x: (TB, 384) bf16 tile; weights bf16 (resident); biases f32.
    x = x_ref[...]

    # linear1 + relu  (bf16 MXU matmul, f32 accumulate; elementwise in f32)
    h = jnp.dot(x, w1_ref[...], preferred_element_type=jnp.float32) + b1_ref[...]
    h = jnp.maximum(h, 0.0)

    # fused linear2 / linear3: one 384 -> 128 matmul.
    # columns [0:64)   -> mu       (valid lanes 0:54)
    # columns [64:128) -> log-sigma (valid lanes 64:118)
    f = jnp.dot(h.astype(jnp.bfloat16), w23_ref[...],
                preferred_element_type=jnp.float32) + b23_ref[...]
    mu = f[:, :D_LAT_PAD]
    s3 = f[:, D_LAT_PAD:]
    sigma = jnp.exp(s3)

    # reparameterization + per-element KL term (log(sigma) == s3, reused)
    z = mu + sigma * noise_ref[...]
    kl_elem = sigma * sigma + mu * mu - s3 - 0.5

    # single lane-dense 128-wide store: [ z (64) | KL elementwise (64) ]
    out_ref[...] = jnp.concatenate([z, kl_elem], axis=-1)


def prepare_params(raw_params):
    """One-time relayout: pad to lane-aligned shapes, fuse W2|W3, cast to bf16."""
    w1, b1, w2, b2, w3, b3 = raw_params
    w1p = jnp.zeros((D_IN_PAD, D_IN_PAD), jnp.float32).at[:D_IN, :D_IN].set(w1)
    b1p = jnp.zeros((1, D_IN_PAD), jnp.float32).at[:, :D_IN].set(b1)
    w23p = (jnp.zeros((D_IN_PAD, 2 * D_LAT_PAD), jnp.float32)
            .at[:D_IN, :D_LAT].set(w2)
            .at[:D_IN, D_LAT_PAD:D_LAT_PAD + D_LAT].set(w3))
    b23p = (jnp.zeros((1, 2 * D_LAT_PAD), jnp.float32)
            .at[:, :D_LAT].set(b2)
            .at[:, D_LAT_PAD:D_LAT_PAD + D_LAT].set(b3))
    return (w1p.astype(jnp.bfloat16), b1p, w23p.astype(jnp.bfloat16), b23p)


@functools.partial(jax.jit, static_argnames=("tb",))
def variational_encoder_forward(x, packed_params, noise, *, tb=256):
    """Full VariationalEncoder forward in one Pallas kernel.

    Returns (z, kl): z has shape [B, 54] float32, kl is a float32 scalar.
    """
    w1p, b1p, w23p, b23p = packed_params
    B = x.shape[0]

    # Batch tile: multiple of 8 sublanes, capped at `tb` (sized for v7x VMEM).
    TB = min(_round_up(tb, 8), _round_up(B, 8))
    B_pad = _round_up(B, TB)
    grid = (B_pad // TB,)

    # Zero-pad inputs to aligned shapes (exact for the matmuls).
    x_pad = jnp.zeros((B_pad, D_IN_PAD), jnp.bfloat16).at[:B, :D_IN].set(
        x.astype(jnp.bfloat16))
    noise_pad = jnp.zeros((B_pad, D_LAT_PAD), jnp.float32).at[:B, :D_LAT].set(noise)

    out = pl.pallas_call(
        _vae_encoder_kernel,
        out_shape=jax.ShapeDtypeStruct((B_pad, 2 * D_LAT_PAD), jnp.float32),
        grid_spec=pltpu.PrefetchScalarGridSpec(
            num_scalar_prefetch=0,
            grid=grid,
            in_specs=[
                pl.BlockSpec((TB, D_IN_PAD), lambda i: (i, 0)),             # x streams
                pl.BlockSpec((D_IN_PAD, D_IN_PAD), lambda i: (0, 0)),       # W1 resident
                pl.BlockSpec((1, D_IN_PAD), lambda i: (0, 0)),              # b1 resident
                pl.BlockSpec((D_IN_PAD, 2 * D_LAT_PAD), lambda i: (0, 0)),  # W2|W3 fused
                pl.BlockSpec((1, 2 * D_LAT_PAD), lambda i: (0, 0)),         # b2|b3 fused
                pl.BlockSpec((TB, D_LAT_PAD), lambda i: (i, 0)),            # noise streams
            ],
            out_specs=pl.BlockSpec((TB, 2 * D_LAT_PAD), lambda i: (i, 0)),
        ),
        compiler_params=pltpu.CompilerParams(
            dimension_semantics=("parallel",),
            vmem_limit_bytes=32 * 1024 * 1024,
        ),
    )(x_pad, w1p, b1p, w23p, b23p, noise_pad)

    # Wrapper-side finalize: slice off padding, reduce KL over the valid lanes.
    z = out[:B, :D_LAT]
    kl_elem = out[:B, D_LAT_PAD:D_LAT_PAD + D_LAT]
    kl = jnp.sum(kl_elem) / (B * D_LAT)
    return z, kl


def init_params(key):
    """Deterministic PyTorch-style (uniform +/- 1/sqrt(fan_in)) initialization.

    Weights are stored as (in_features, out_features) so the kernel computes x @ W.
    """
    def linear_init(k, fan_in, fan_out):
        kw, kb = jax.random.split(k)
        bound = 1.0 / np.sqrt(fan_in)
        w = jax.random.uniform(kw, (fan_in, fan_out), jnp.float32, -bound, bound)
        b = jax.random.uniform(kb, (1, fan_out), jnp.float32, -bound, bound)
        return w, b

    k1, k2, k3 = jax.random.split(key, 3)
    w1, b1 = linear_init(k1, D_IN, D_IN)
    w2, b2 = linear_init(k2, D_IN, D_LAT)
    w3, b3 = linear_init(k3, D_IN, D_LAT)
    return (w1, b1, w2, b2, w3, b3)


def _reference_forward(x, raw_params, noise):
    """Pure-JAX reference matching the kernel numerics (bf16 MXU operands, f32 math)."""
    w1, b1, w2, b2, w3, b3 = raw_params
    bf = jnp.bfloat16
    h = jnp.maximum(
        jnp.dot(x.astype(bf), w1.astype(bf), preferred_element_type=jnp.float32) + b1,
        0.0)
    hb = h.astype(bf)
    mu = jnp.dot(hb, w2.astype(bf), preferred_element_type=jnp.float32) + b2
    s3 = jnp.dot(hb, w3.astype(bf), preferred_element_type=jnp.float32) + b3
    sigma = jnp.exp(s3)
    z = mu + sigma * noise
    kl = jnp.mean(sigma ** 2 + mu ** 2 - s3 - 0.5)
    return z, kl


if __name__ == "__main__":
    key = jax.random.PRNGKey(0)
    k_param, k_x, k_noise = jax.random.split(key, 3)

    B = 8  # small batch for the demo
    raw_params = init_params(k_param)
    packed = prepare_params(raw_params)
    x = jax.random.normal(k_x, (B, D_IN), jnp.float32)
    noise = jax.random.normal(k_noise, (B, D_LAT), jnp.float32)

    z, kl = variational_encoder_forward(x, packed, noise)
    z = jax.block_until_ready(z)
    kl = jax.block_until_ready(kl)

    # sanity check against pure-JAX reference (same bf16-matmul numerics)
    z_ref, kl_ref = _reference_forward(x, raw_params, noise)
    np.testing.assert_allclose(np.asarray(z), np.asarray(z_ref), rtol=5e-3, atol=5e-3)
    np.testing.assert_allclose(np.asarray(kl), np.asarray(kl_ref), rtol=5e-3, atol=5e-3)

    print("KERNEL_OK")
</pallas_src>

<mosaic_0001>
module attributes {stable_mosaic.version = 11 : i64} {
  func.func @_vae_encoder_kernel(%arg0: i32, %arg1: memref<8x384xbf16, #tpu.memory_space<vmem>>, %arg2: memref<384x384xbf16, #tpu.memory_space<vmem>>, %arg3: memref<1x384xf32, #tpu.memory_space<vmem>>, %arg4: memref<384x128xbf16, #tpu.memory_space<vmem>>, %arg5: memref<1x128xf32, #tpu.memory_space<vmem>>, %arg6: memref<8x64xf32, #tpu.memory_space<vmem>>, %arg7: memref<8x128xf32, #tpu.memory_space<vmem>>) attributes {dimension_semantics = [#tpu.dimension_semantics<parallel>], iteration_bounds = array<i64: 1>, scalar_prefetch = 0 : i64, scratch_operands = 0 : i64, tpu.core_type = #tpu.core_type<tc>, window_params = [{transform_indices = @transform_0, window_bounds = array<i64: 8, 384>}, {pipeline_mode = #tpu.pipeline_mode<synchronous>, transform_indices = @transform_1, window_bounds = array<i64: 384, 384>}, {pipeline_mode = #tpu.pipeline_mode<synchronous>, transform_indices = @transform_2, window_bounds = array<i64: 1, 384>}, {pipeline_mode = #tpu.pipeline_mode<synchronous>, transform_indices = @transform_3, window_bounds = array<i64: 384, 128>}, {pipeline_mode = #tpu.pipeline_mode<synchronous>, transform_indices = @transform_4, window_bounds = array<i64: 1, 128>}, {transform_indices = @transform_5, window_bounds = array<i64: 8, 64>}, {transform_indices = @transform_6, window_bounds = array<i64: 8, 128>}]} {
    %c0 = arith.constant 0 : index
    %c0_0 = arith.constant 0 : index
    %0 = vector.load %arg1[%c0, %c0_0] : memref<8x384xbf16, #tpu.memory_space<vmem>>, vector<8x384xbf16>
    %c0_1 = arith.constant 0 : index
    %c0_2 = arith.constant 0 : index
    %1 = vector.load %arg2[%c0_1, %c0_2] : memref<384x384xbf16, #tpu.memory_space<vmem>>, vector<384x384xbf16>
    %cst = arith.constant dense<0.000000e+00> : vector<8x384xf32>
    %2 = tpu.matmul %0, %1, %cst {dimension_numbers = #tpu.dot_dimension_numbers<[1], [0], [0], [1], [0, 0, 1, 1], [], []>} : vector<8x384xbf16>, vector<384x384xbf16>, vector<8x384xf32> -> vector<8x384xf32>
    %c0_3 = arith.constant 0 : index
    %c0_4 = arith.constant 0 : index
    %3 = vector.load %arg3[%c0_3, %c0_4] : memref<1x384xf32, #tpu.memory_space<vmem>>, vector<1x384xf32>
    %4 = vector.broadcast %3 : vector<1x384xf32> to vector<8x384xf32>
    %5 = arith.addf %2, %4 : vector<8x384xf32>
    %cst_5 = arith.constant 0.000000e+00 : f32
    %6 = vector.broadcast %cst_5 : f32 to vector<8x384xf32>
    %7 = arith.maximumf %5, %6 : vector<8x384xf32>
    %8 = arith.truncf %7 : vector<8x384xf32> to vector<8x384xbf16>
    %c0_6 = arith.constant 0 : index
    %c0_7 = arith.constant 0 : index
    %9 = vector.load %arg4[%c0_6, %c0_7] : memref<384x128xbf16, #tpu.memory_space<vmem>>, vector<384x128xbf16>
    %cst_8 = arith.constant dense<0.000000e+00> : vector<8x128xf32>
    %10 = tpu.matmul %8, %9, %cst_8 {dimension_numbers = #tpu.dot_dimension_numbers<[1], [0], [0], [1], [0, 0, 1, 1], [], []>} : vector<8x384xbf16>, vector<384x128xbf16>, vector<8x128xf32> -> vector<8x128xf32>
    %c0_9 = arith.constant 0 : index
    %c0_10 = arith.constant 0 : index
    %11 = vector.load %arg5[%c0_9, %c0_10] : memref<1x128xf32, #tpu.memory_space<vmem>>, vector<1x128xf32>
    %12 = vector.broadcast %11 : vector<1x128xf32> to vector<8x128xf32>
    %13 = arith.addf %10, %12 : vector<8x128xf32>
    %14 = vector.extract_strided_slice %13 {offsets = [0, 0], sizes = [8, 64], strides = [1, 1]} : vector<8x128xf32> to vector<8x64xf32>
    %15 = vector.extract_strided_slice %13 {offsets = [0, 64], sizes = [8, 64], strides = [1, 1]} : vector<8x128xf32> to vector<8x64xf32>
    %16 = math.exp %15 : vector<8x64xf32>
    %c0_11 = arith.constant 0 : index
    %c0_12 = arith.constant 0 : index
    %17 = vector.load %arg6[%c0_11, %c0_12] : memref<8x64xf32, #tpu.memory_space<vmem>>, vector<8x64xf32>
    %18 = arith.mulf %16, %17 : vector<8x64xf32>
    %19 = arith.addf %14, %18 : vector<8x64xf32>
    %20 = arith.mulf %16, %16 : vector<8x64xf32>
    %21 = arith.mulf %14, %14 : vector<8x64xf32>
    %22 = arith.addf %20, %21 : vector<8x64xf32>
    %23 = arith.subf %22, %15 : vector<8x64xf32>
    %cst_13 = arith.constant 5.000000e-01 : f32
    %24 = vector.broadcast %cst_13 : f32 to vector<8x64xf32>
    %25 = arith.subf %23, %24 : vector<8x64xf32>
    %26 = tpu.concatenate %19, %25 in 1 : vector<8x64xf32>, vector<8x64xf32> -> vector<8x128xf32>
    %c0_14 = arith.constant 0 : index
    %c0_15 = arith.constant 0 : index
    %27 = vector.load %arg7[%c0_14, %c0_15] : memref<8x128xf32, #tpu.memory_space<vmem>>, vector<8x128xf32>
    tpu.vector_store %arg7[%c0_14, %c0_15], %26 {strides = array<i32>} : memref<8x128xf32, #tpu.memory_space<vmem>>, vector<8x128xf32>,
    return
  }
  func.func @transform_0(%arg0: i32) -> (i32, i32) {
    %c0_i32 = arith.constant 0 : i32
    %c0_i32_0 = arith.constant 0 : i32
    return %arg0, %c0_i32 : i32, i32
  }
  func.func @transform_1(%arg0: i32) -> (i32, i32) {
    %c0_i32 = arith.constant 0 : i32
    %c0_i32_0 = arith.constant 0 : i32
    %c0_i32_1 = arith.constant 0 : i32
    return %c0_i32, %c0_i32_0 : i32, i32
  }
  func.func @transform_2(%arg0: i32) -> (i32, i32) {
    %c0_i32 = arith.constant 0 : i32
    %c0_i32_0 = arith.constant 0 : i32
    %c0_i32_1 = arith.constant 0 : i32
    return %c0_i32, %c0_i32_0 : i32, i32
  }
  func.func @transform_3(%arg0: i32) -> (i32, i32) {
    %c0_i32 = arith.constant 0 : i32
    %c0_i32_0 = arith.constant 0 : i32
    %c0_i32_1 = arith.constant 0 : i32
    return %c0_i32, %c0_i32_0 : i32, i32
  }
  func.func @transform_4(%arg0: i32) -> (i32, i32) {
    %c0_i32 = arith.constant 0 : i32
    %c0_i32_0 = arith.constant 0 : i32
    %c0_i32_1 = arith.constant 0 : i32
    return %c0_i32, %c0_i32_0 : i32, i32
  }
  func.func @transform_5(%arg0: i32) -> (i32, i32) {
    %c0_i32 = arith.constant 0 : i32
    %c0_i32_0 = arith.constant 0 : i32
    return %arg0, %c0_i32 : i32, i32
  }
  func.func @transform_6(%arg0: i32) -> (i32, i32) {
    %c0_i32 = arith.constant 0 : i32
    %c0_i32_0 = arith.constant 0 : i32
    return %arg0, %c0_i32 : i32, i32
  }
}

</mosaic_0001>

<bundles_post_ra>
// kernel: variational_encoder_forward.1
= control target key start
LH: loop header
LB: loop body
LE: loop exit
PB: predicated region body
PF: predicated region fallthrough
CT: control target
= control target key end

     0   :  { %11 = vsyncpa [#allocation3], 0  ;;  %s1518_s0 = inlined_call_operand.vmem [shape: bf16[8,384], index: 0, kind: input, shape index: {}]   ;;  %s1519_s1 = inlined_call_operand.hbm [shape: bf16[384,384], index: 1, kind: input, shape index: {}]   ;;  %s1520_s2 = inlined_call_operand.vmem [shape: f32[1,384], index: 2, kind: input, shape index: {}]   ;;  %s1521_s3 = inlined_call_operand.hbm [shape: bf16[384,128], index: 3, kind: input, shape index: {}]   ;;  %s1522_s4 = inlined_call_operand.vmem [shape: f32[1,128], index: 4, kind: input, shape index: {}]   ;;  %s1523_s5 = inlined_call_operand.vmem [shape: f32[8,64], index: 5, kind: input, shape index: {}]   ;;  %s1524_s6 = inlined_call_operand.vmem [shape: f32[8,128], index: 6, kind: output, shape index: {}]  }
   0x1   :  { %12 = vsyncpa [#allocation5], 0  ;;  %s1421_s21 = smov [#allocation2]  }
   0x2   :  { %s20_s22 = sshll.u32 %s1421_s21, 4  ;;  %s21_s22 = int_to_ptr.vmem [resolvable:$true] %s20_s22 }
   0x3   :  { %s1385_s23 = scalar_lea.vmem %s21_s22, 9216  ;;  %p1390_p1 = scmp.lt.s32.totalorder %s21_s22, %s21_s22 }
   0x4   :  { %p1386_p0 = scmp.ne.s32.totalorder %s21_s22, %s1385_s23  ;;  %p1391_p2 = scmp.lt.s32.totalorder %s1385_s23, %s1385_s23 }
   0x6   :  { %p1392_p3 = por %p1391_p2, %p1390_p1 }
   0x8   :  { %p1393_p4 = pnand %p1392_p3, %p1386_p0 }
   0xa   :  { %1396 = shalt.err (!%p1393_p4)
}
   0xb   :  { %s1422_s24 = smov 192   ;;  %s1423_s25 = smov 12  }
   0xc   :  { %26 = dma.hbm_to_vmem [thread:$0]  %s1519_s1, 9216, %s21_s22, [#allocation3], %s1422_s24, %s1422_s24, %s1423_s25  }
   0xd   :  { %s1424_s28 = smov [#allocation4]  }
   0xe   :  { %s34_s29 = sshll.u32 %s1424_s28, 4  ;;  %s35_s29 = int_to_ptr.vmem [resolvable:$true] %s34_s29 }
   0xf   :  { %s1405_s30 = scalar_lea.vmem %s35_s29, 3072  ;;  %p1410_p6 = scmp.lt.s32.totalorder %s35_s29, %s35_s29 }
  0x10   :  { %p1406_p5 = scmp.ne.s32.totalorder %s35_s29, %s1405_s30  ;;  %p1411_p7 = scmp.lt.s32.totalorder %s1405_s30, %s1405_s30 }
  0x12   :  { %p1412_p8 = por %p1411_p7, %p1410_p6 }
  0x14   :  { %p1413_p9 = pnand %p1412_p8, %p1406_p5 }
  0x16   :  { %1416 = shalt.err (!%p1413_p9)
}
  0x17   :  { %s1425_s7 = smov 64   ;;  %s1426_s8 = smov 4  }
  0x18   :  { %40 = dma.hbm_to_vmem [thread:$0]  %s1521_s3, 3072, %s35_s29, [#allocation5], %s1425_s7, %s1425_s7, %s1426_s8  }
  0x19   :  { %1417 = dma.done.wait [#allocation3], 9216  }
  0x1a   :  { %1418 = vsyncadd [#allocation3], 4294958080 }
  0x1b   :  { %1419 = dma.done.wait [#allocation5], 3072  }
  0x1c   :  { %1420 = vsyncadd [#allocation5], 4294964224  ;;  %v1427_v0 = vmov 0   ;;  %v1252_v1 = vld [vmem:[#allocation2 + $0xac] ss:$12 sps:$4 sm:$0xff]   ;;  %v52_v42 = vld [vmem:[%s1518_s0] sm:$0xff] }
  0x1d   :  { %635 = vmatprep.mubr.bf16.mxu1 %v1427_v0  ;;  %v1254_v2 = vld [vmem:[#allocation2 + $0xa8] ss:$12 sps:$4 sm:$0xff]   ;;  %562 = vmatprep.subr.bf16.mxu0 %v1252_v1  ;;  %v1257_v4 = vld [vmem:[#allocation2 + $0x90] ss:$12 sps:$4 sm:$0xff]   ;;  %v1260_v6 = vld [vmem:[#allocation2 + $0x78] ss:$12 sps:$4 sm:$0xff]   ;;  %v1041_v44 = vcombine.high %v52_v42, %v52_v42 }
  0x1e   :  { %v1255_v3 = vld [vmem:[#allocation2 + $0x94] ss:$12 sps:$4 sm:$0xff]   ;;  %563 = vmatpush1.bf16.msra.mxu0 %v1254_v2  ;;  %v1258_v5 = vld [vmem:[#allocation2 + $0x7c] ss:$12 sps:$4 sm:$0xff]   ;;  %v1261_v7 = vld [vmem:[#allocation2 + $0x64] ss:$12 sps:$4 sm:$0xff]  }
  0x1f   :  { %564 = vmatprep.subr.bf16.mxu0 %v1255_v3  ;;  %v1269_v8 = vld [vmem:[#allocation2 + $0x22c] ss:$12 sps:$4 sm:$0xff]   ;;  %v1272_v9 = vld [vmem:[#allocation2 + $0x228] ss:$12 sps:$4 sm:$0xff]   ;;  %v1278_v12 = vld [vmem:[#allocation2 + $0x210] ss:$12 sps:$4 sm:$0xff]   ;;  %594 = vmatprep.mubr.bf16.mxu0 %v1041_v44  ;;  %v1040_v3 = vcombine.low %v52_v42, %v52_v42 }
  0x20   :  { %603 = vmatprep.subr.bf16.mxu1 %v1269_v8  ;;  %v1263_v10 = vld [vmem:[#allocation2 + $0x60] ss:$12 sps:$4 sm:$0xff]   ;;  %v1281_v14 = vld [vmem:[#allocation2 + $0x1fc] ss:$12 sps:$4 sm:$0xff]   ;;  %v1284_v16 = vld [vmem:[#allocation2 + $0x1f8] ss:$12 sps:$4 sm:$0xff]  }
  0x21   :  { %604 = vmatpush1.bf16.msra.mxu1 %v1272_v9  ;;  %v1275_v11 = vld [vmem:[#allocation2 + $0x214] ss:$12 sps:$4 sm:$0xff]   ;;  %v1264_v13 = vld [vmem:[#allocation2 + $0x4c] ss:$12 sps:$4 sm:$0xff]   ;;  %v1287_v18 = vld [vmem:[#allocation2 + $0x1e4] ss:$12 sps:$4 sm:$0xff]  }
  0x22   :  { %565 = vmatpush1.bf16.msra.mxu0 %v1257_v4  ;;  %605 = vmatprep.subr.bf16.mxu1 %v1275_v11  ;;  %v1266_v15 = vld [vmem:[#allocation2 + $0x48] ss:$12 sps:$4 sm:$0xff]   ;;  %v1271_v19 = vld [vmem:[#allocation2 + $0x30] ss:$12 sps:$4 sm:$0xff]   ;;  %v1290_v21 = vld [vmem:[#allocation2 + $0x1e0] ss:$12 sps:$4 sm:$0xff]  }
  0x23   :  { %566 = vmatprep.subr.bf16.mxu0 %v1258_v5  ;;  %v1267_v17 = vld [vmem:[#allocation2 + $0x34] ss:$12 sps:$4 sm:$0xff]   ;;  %v1273_v20 = vld [vmem:[#allocation2 + $0x1c] ss:$12 sps:$4 sm:$0xff]   ;;  %v1293_v22 = vld [vmem:[#allocation2 + $0x1cc] ss:$12 sps:$4 sm:$0xff]  }
  0x24   :  { %v1277_v23 = vld [vmem:[#allocation2 + $0x18] ss:$12 sps:$4 sm:$0xff]   ;;  %v1296_v24 = vld [vmem:[#allocation2 + $0x1c8] ss:$12 sps:$4 sm:$0xff]   ;;  %v1283_v27 = vld [vmem:[#allocation2] ss:$12 sps:$4 sm:$0xff]  }
  0x25   :  { %606 = vmatpush1.bf16.msra.mxu1 %v1278_v12  ;;  %v1279_v25 = vld [vmem:[#allocation2 + $0x4] ss:$12 sps:$4 sm:$0xff]   ;;  %v1299_v26 = vld [vmem:[#allocation2 + $0x1b4] ss:$12 sps:$4 sm:$0xff]   ;;  %v1285_v28 = vld [vmem:[#allocation2 + $0x16c] ss:$12 sps:$4 sm:$0xff]  }
  0x26   :  { %567 = vmatpush1.bf16.msra.mxu0 %v1260_v6  ;;  %607 = vmatprep.subr.bf16.mxu1 %v1281_v14  ;;  %v1302_v29 = vld [vmem:[#allocation2 + $0x1b0] ss:$12 sps:$4 sm:$0xff]   ;;  %v1289_v31 = vld [vmem:[#allocation2 + $0x168] ss:$12 sps:$4 sm:$0xff]   ;;  %v1308_v33 = vld [vmem:[#allocation2 + $0x198] ss:$12 sps:$4 sm:$0xff]  }
  0x27   :  { %568 = vmatprep.subr.bf16.mxu0 %v1261_v7  ;;  %v1305_v30 = vld [vmem:[#allocation2 + $0x19c] ss:$12 sps:$4 sm:$0xff]   ;;  %v1291_v32 = vld [vmem:[#allocation2 + $0x154] ss:$12 sps:$4 sm:$0xff]   ;;  %v1311_v34 = vld [vmem:[#allocation2 + $0x184] ss:$12 sps:$4 sm:$0xff]  }
  0x28   :  { %v1295_v35 = vld [vmem:[#allocation2 + $0x150] ss:$12 sps:$4 sm:$0xff]   ;;  %v1314_v37 = vld [vmem:[#allocation2 + $0x180] ss:$12 sps:$4 sm:$0xff]   ;;  %v1301_v39 = vld [vmem:[#allocation2 + $0x138] ss:$12 sps:$4 sm:$0xff]  }
  0x29   :  { %608 = vmatpush1.bf16.msra.mxu1 %v1284_v16  ;;  %v1297_v36 = vld [vmem:[#allocation2 + $0x13c] ss:$12 sps:$4 sm:$0xff]   ;;  %v1303_v40 = vld [vmem:[#allocation2 + $0x124] ss:$12 sps:$4 sm:$0xff]   ;;  %v1307_v46 = vld [vmem:[#allocation2 + $0x120] ss:$12 sps:$4 sm:$0xff]  }
  0x2a   :  { %569 = vmatpush1.bf16.msra.mxu0 %v1263_v10  ;;  %609 = vmatprep.subr.bf16.mxu1 %v1287_v18  ;;  %v1317_v38 = vld [vmem:[#allocation2 + $0x170] ss:$12 sps:$4 sm:$0xff]   ;;  %v1476_v41 = vld [vmem:[%s1518_s0 + $0x8] ss:$0 sps:$4 sm:$0xff]   ;;  %v1323_v45 = vld [vmem:[#allocation2 + $0x158] ss:$12 sps:$4 sm:$0xff]  }
  0x2b   :  { %570 = vmatprep.subr.bf16.mxu0 %v1264_v13  ;;  %v1320_v43 = vld [vmem:[#allocation2 + $0xb0] ss:$12 sps:$4 sm:$0xff]   ;;  %v1309_v47 = vld [vmem:[#allocation2 + $0x10c] ss:$12 sps:$4 sm:$0xff]   ;;  %v1313_v50 = vld [vmem:[#allocation2 + $0x108] ss:$12 sps:$4 sm:$0xff]  }
  0x2c   :  { %v1325_v48 = vld [vmem:[#allocation2 + $0x98] ss:$12 sps:$4 sm:$0xff]   ;;  %v1328_v49 = vld [vmem:[#allocation2 + $0x140] ss:$12 sps:$4 sm:$0xff]   ;;  %v1333_v53 = vld [vmem:[#allocation2 + $0x128] ss:$12 sps:$4 sm:$0xff]  }
  0x2d   :  { %610 = vmatpush1.bf16.msra.mxu1 %v1290_v21  ;;  %v1315_v51 = vld [vmem:[#allocation2 + $0xf4] ss:$12 sps:$4 sm:$0xff]   ;;  %v1318_v54 = vld [vmem:[#allocation2 + $0xf0] ss:$12 sps:$4 sm:$0xff]   ;;  %v1324_v58 = vld [vmem:[#allocation2 + $0xd8] ss:$12 sps:$4 sm:$0xff]  }
  0x2e   :  { %571 = vmatpush1.bf16.msra.mxu0 %v1266_v15  ;;  %611 = vmatprep.subr.bf16.mxu1 %v1293_v22  ;;  %v1330_v52 = vld [vmem:[#allocation2 + $0x80] ss:$12 sps:$4 sm:$0xff]   ;;  %v1321_v55 = vld [vmem:[#allocation2 + $0xdc] ss:$12 sps:$4 sm:$0xff]   ;;  %v1326_v59 = vld [vmem:[#allocation2 + $0xc4] ss:$12 sps:$4 sm:$0xff]  }
  0x2f   :  { %572 = vmatprep.subr.bf16.mxu0 %v1267_v17  ;;  %v1334_v56 = vld [vmem:[#allocation2 + $0x68] ss:$12 sps:$4 sm:$0xff]   ;;  %v1336_v57 = vld [vmem:[#allocation2 + $0x110] ss:$12 sps:$4 sm:$0xff]   ;;  %v1339_v61 = vld [vmem:[#allocation2 + $0xf8] ss:$12 sps:$4 sm:$0xff]  }
  0x30   :  { %v1337_v60 = vld [vmem:[#allocation2 + $0x50] ss:$12 sps:$4 sm:$0xff]   ;;  %v1329_v62 = vld [vmem:[#allocation2 + $0xc0] ss:$12 sps:$4 sm:$0xff]   ;;  %v1340_v63 = vld [vmem:[#allocation2 + $0x38] ss:$12 sps:$4 sm:$0xff]  }
  0x31   :  { %612 = vmatpush1.bf16.msra.mxu1 %v1296_v24  ;;  %v1342_v0 = vld [vmem:[#allocation2 + $0xe0] ss:$12 sps:$4 sm:$0xff]   ;;  %v1335_v1 = vld [vmem:[#allocation2 + $0x230] ss:$12 sps:$4 sm:$0xff]   ;;  %v1345_v4 = vld [vmem:[#allocation2 + $0xc8] ss:$12 sps:$4 sm:$0xff]  }
  0x32   :  { %573 = vmatpush1.bf16.msra.mxu0 %v1271_v19  ;;  %613 = vmatprep.subr.bf16.mxu1 %v1299_v26  ;;  %v1343_v2 = vld [vmem:[#allocation2 + $0x20] ss:$12 sps:$4 sm:$0xff]   ;;  %v1428_v5 = vmov 0.0   ;;  %v1338_v6 = vld [vmem:[#allocation2 + $0x218] ss:$12 sps:$4 sm:$0xff]   ;;  %vm1429_vm0 = vmmov 0  }
  0x33   :  { %574 = vmatprep.subr.bf16.mxu0 %v1273_v20  ;;  %v1346_v7 = vld [vmem:[#allocation2 + $0x8] ss:$12 sps:$4 sm:$0xff]   ;;  %v1351_v8 = vld [vmem:[#allocation4 + $0x78] sm:$0xff]   ;;  %v1341_v9 = vld [vmem:[#allocation2 + $0x200] ss:$12 sps:$4 sm:$0xff]   ;;  %vm1031_vm1 = vcmask 523264  }
  0x34   :  { %v1352_v10 = vld [vmem:[#allocation4 + $0x38] sm:$0xff]   ;;  %v1353_v11 = vld [vmem:[#allocation4 + $0x70] sm:$0xff]   ;;  %v1355_v14 = vld [vmem:[#allocation4 + $0x68] sm:$0xff]  }
  0x35   :  { %614 = vmatpush1.bf16.msra.mxu1 %v1302_v29  ;;  %v1344_v12 = vld [vmem:[#allocation2 + $0x1e8] ss:$12 sps:$4 sm:$0xff]   ;;  %v1347_v15 = vld [vmem:[#allocation2 + $0x1d0] ss:$12 sps:$4 sm:$0xff]   ;;  %v1348_v16 = vld [vmem:[#allocation2 + $0x1b8] ss:$12 sps:$4 sm:$0xff]  }
  0x36   :  { %575 = vmatpush1.bf16.msra.mxu0 %v1277_v23  ;;  %615 = vmatprep.subr.bf16.mxu1 %v1305_v30  ;;  %v1354_v13 = vld [vmem:[#allocation4 + $0x30] sm:$0xff]   ;;  %v1349_v17 = vld [vmem:[#allocation2 + $0x1a0] ss:$12 sps:$4 sm:$0xff]   ;;  %v1359_v22 = vld [vmem:[#allocation4 + $0x58] sm:$0xff]  }
  0x37   :  { %576 = vmatprep.subr.bf16.mxu0 %v1279_v25  ;;  %v1350_v18 = vld [vmem:[#allocation2 + $0x188] ss:$12 sps:$4 sm:$0xff]   ;;  %v1357_v20 = vld [vmem:[#allocation4 + $0x60] sm:$0xff]   ;;  %v1360_v23 = vld [vmem:[#allocation4 + $0x18] sm:$0xff]  }
  0x38   :  { %v1356_v19 = vld [vmem:[#allocation4 + $0x28] sm:$0xff]   ;;  %v1358_v21 = vld [vmem:[#allocation4 + $0x20] sm:$0xff]   ;;  %v1361_v24 = vld [vmem:[#allocation4 + $0x50] sm:$0xff]  }
  0x39   :  { %616 = vmatpush1.bf16.msra.mxu1 %v1308_v33  ;;  %v1362_v25 = vld [vmem:[#allocation4 + $0x10] sm:$0xff]   ;;  %v1363_v26 = vld [vmem:[#allocation4 + $0x48] sm:$0xff]   ;;  %v1366_v29 = vld [vmem:[#allocation4 + $0xb8] sm:$0xff]  }
  0x3a   :  { %577 = vmatpush1.bf16.msra.mxu0 %v1283_v27  ;;  %617 = vmatprep.subr.bf16.mxu1 %v1311_v34  ;;  %v1364_v27 = vld [vmem:[#allocation4 + $0x8] sm:$0xff]   ;;  %v1367_v30 = vld [vmem:[#allocation4] sm:$0xff]   ;;  %v1371_v34 = vld [vmem:[#allocation4 + $0x98] sm:$0xff]  }
  0x3b   :  { %578 = vmatprep.subr.bf16.mxu0 %v1285_v28  ;;  %v1365_v28 = vld [vmem:[#allocation4 + $0x40] sm:$0xff]  }
  0x3c   :  { %v1370_v33 = vld [vmem:[#allocation4 + $0xa0] sm:$0xff]  }
  0x3d   :  { %618 = vmatpush1.bf16.msra.mxu1 %v1314_v37  ;;  %v1374_v37 = vld [vmem:[#allocation4 + $0x80] sm:$0xff]  }
  0x3e   :  { %579 = vmatpush2.bf16.msra.mxu0 %v1289_v31  ;;  %1141 = vmatprep.subr.bf16.mxu1 %v1317_v38  ;;  %v1368_v31 = vld [vmem:[#allocation4 + $0xb0] sm:$0xff]   ;;  %v1011_v38 = vld [vmem:[%s1523_s5] sm:$0xff] }
  0x3f   :  { %580 = vmatprep.subr.bf16.mxu0 %v1291_v32  ;;  %v1369_v32 = vld [vmem:[#allocation4 + $0xa8] sm:$0xff]   ;;  %1013 = vrot.lane.b32.xlu0 %v1011_v38, %s1425_s7 }
  0x40   :  { %636 = vmatmul.mubr.bf16.vlgmr.msra.gmra.mxu1 %v1476_v41 }
  0x41   :  { %1142 = vmatpush3.bf16.msra.mxu1 %v1320_v43  ;;  %676 = vmatprep.mubr.bf16.mxu1 %v1041_v44  ;;  %v152_v43 = vlaneseq }
  0x42   :  { %581 = vmatpush2.bf16.msra.mxu0 %v1295_v35  ;;  %1143 = vmatprep.subr.bf16.mxu1 %v1323_v45  ;;  %v1372_v35 = vld [vmem:[#allocation4 + $0x90] sm:$0xff]  }
  0x43   :  { %582 = vmatprep.subr.bf16.mxu0 %v1297_v36  ;;  %v1373_v36 = vld [vmem:[#allocation4 + $0x88] sm:$0xff]   ;;  %v153_v44 = vshrl.u32 %v152_v43, 7 }
  0x45   :  { %1144 = vmatpush3.bf16.msra.mxu1 %v1325_v48  ;;  %v154_v45 = vsub.s32 0, %v153_v44 }
  0x46   :  { %583 = vmatpush2.bf16.msra.mxu0 %v1301_v39  ;;  %1145 = vmatprep.subr.bf16.mxu1 %v1328_v49 }
  0x47   :  { %584 = vmatprep.subr.bf16.mxu0 %v1303_v40 }
  0x49   :  { %1146 = vmatpush3.bf16.msra.mxu1 %v1330_v52 }
  0x4a   :  { %585 = vmatpush2.bf16.msra.mxu0 %v1307_v46  ;;  %1147 = vmatprep.subr.bf16.mxu1 %v1333_v53  ;;  %v150_v46 = vld [vmem:[%s1520_s2] sm:$0x7] }
  0x4b   :  { %586 = vmatprep.subr.bf16.mxu0 %v1309_v47  ;;  %v158_v47 = vsub.s32 1, %v153_v44  ;;  %v155_v48 = vrot.slane %v150_v46, %v154_v45 }
  0x4d   :  { %1148 = vmatpush3.bf16.msra.mxu1 %v1334_v56  ;;  %v159_v49 = vrot.slane %v150_v46, %v158_v47 }
  0x4e   :  { %587 = vmatpush2.bf16.msra.mxu0 %v1313_v50  ;;  %1149 = vmatprep.subr.bf16.mxu1 %v1336_v57 }
  0x4f   :  { %588 = vmatprep.subr.bf16.mxu0 %v1315_v51 }
  0x51   :  { %1150 = vmatpush3.bf16.msra.mxu1 %v1337_v60 }
  0x52   :  { %589 = vmatpush2.bf16.msra.mxu0 %v1318_v54  ;;  %1151 = vmatprep.subr.bf16.mxu1 %v1339_v61 }
  0x53   :  { %590 = vmatprep.subr.bf16.mxu0 %v1321_v55 }
  0x55   :  { %1152 = vmatpush3.bf16.msra.mxu1 %v1340_v63 }
  0x56   :  { %591 = vmatpush2.bf16.msra.mxu0 %v1324_v58  ;;  %1153 = vmatprep.subr.bf16.mxu1 %v1342_v0 }
  0x57   :  { %592 = vmatprep.subr.bf16.mxu0 %v1326_v59 }
  0x59   :  { %1154 = vmatpush3.bf16.msra.mxu1 %v1343_v2  ;;  %v162_v2 = vsub.s32 2, %v153_v44 }
  0x5a   :  { %593 = vmatpush2.bf16.msra.mxu0 %v1329_v62  ;;  %1155 = vmatprep.subr.bf16.mxu1 %v1345_v4 }
  0x5b   :  { %1203 = vmatprep.subr.bf16.mxu0 %v1428_v5  ;;  %v163_v4 = vrot.slane %v150_v46, %v162_v2 }
  0x5d   :  { %595 = vmatmul.mubr.bf16.vlgmr.msra.gmra.mxu0 %v1040_v3  ;;  %1156 = vmatpush3.bf16.msra.mxu1 %v1346_v7 }
  0x5e   :  { %1204 = vmatpush3.bf16.msra.mxu0 %v1335_v1  ;;  %1219 = vmatprep.mubr.msk.bf16.mxu0 %vm1429_vm0, %v1428_v5 }
  0x5f   :  { %1205 = vmatprep.subr.bf16.mxu0 %v1428_v5  ;;  %1172 = vmatprep.subr.bf16.mxu1 %v1351_v8 }
  0x60   :  { %677 = vmatmul.mubr.bf16.vlgmr.msra.gmra.mxu1 %v1040_v3 }
  0x61   :  { %1173 = vmatpush3.bf16.msra.mxu1 %v1352_v10 }
  0x62   :  { %1206 = vmatpush3.bf16.msra.mxu0 %v1338_v6  ;;  %1174 = vmatprep.subr.bf16.mxu1 %v1353_v11 }
  0x63   :  { %1207 = vmatprep.subr.bf16.mxu0 %v1428_v5 }
  0x65   :  { %1175 = vmatpush3.bf16.msra.mxu1 %v1354_v13 }
  0x66   :  { %1208 = vmatpush3.bf16.msra.mxu0 %v1341_v9  ;;  %1176 = vmatprep.subr.bf16.mxu1 %v1355_v14 }
  0x67   :  { %1209 = vmatprep.subr.bf16.mxu0 %v1428_v5 }
  0x69   :  { %1177 = vmatpush3.bf16.msra.mxu1 %v1356_v19 }
  0x6a   :  { %1210 = vmatpush3.bf16.msra.mxu0 %v1344_v12  ;;  %1178 = vmatprep.subr.bf16.mxu1 %v1357_v20 }
  0x6b   :  { %1211 = vmatprep.subr.bf16.mxu0 %v1428_v5 }
  0x6d   :  { %1179 = vmatpush3.bf16.msra.mxu1 %v1358_v21 }
  0x6e   :  { %1212 = vmatpush3.bf16.msra.mxu0 %v1347_v15  ;;  %1180 = vmatprep.subr.bf16.mxu1 %v1359_v22 }
  0x6f   :  { %1213 = vmatprep.subr.bf16.mxu0 %v1428_v5 }
  0x71   :  { %1181 = vmatpush3.bf16.msra.mxu1 %v1360_v23 }
  0x72   :  { %1214 = vmatpush3.bf16.msra.mxu0 %v1348_v16  ;;  %1182 = vmatprep.subr.bf16.mxu1 %v1361_v24 }
  0x73   :  { %1215 = vmatprep.subr.bf16.mxu0 %v1428_v5 }
  0x75   :  { %1183 = vmatpush3.bf16.msra.mxu1 %v1362_v25 }
  0x76   :  { %1216 = vmatpush3.bf16.msra.mxu0 %v1349_v17  ;;  %1184 = vmatprep.subr.bf16.mxu1 %v1363_v26 }
  0x77   :  { %1217 = vmatprep.subr.bf16.mxu0 %v1428_v5 }
  0x79   :  { %1185 = vmatpush3.bf16.msra.mxu1 %v1364_v27 }
  0x7a   :  { %1218 = vmatpush3.bf16.msra.mxu0 %v1350_v18  ;;  %1186 = vmatprep.subr.bf16.mxu1 %v1365_v28  ;;  %v1115_v18 = vld [vmem:[%s1522_s4] ss:$0 sm:$0xff] }
  0x7b   :  { %1223 = vmatprep.subr.bf16.mxu0 %v1428_v5 }
  0x7d   :  { %1220 = vmatmul.mubr.bf16.vlgmr.msra.gmra.mxu0 %v1476_v41  ;;  %1187 = vmatpush3.bf16.msra.mxu1 %v1367_v30 }
  0x7e   :  { %1239 = vmatprep.mubr.msk.bf16.mxu0 %vm1429_vm0, %v1428_v5  ;;  %1224 = vmatpush3.bf16.msra.mxu0 %v1366_v29 }
  0x7f   :  { %1225 = vmatprep.subr.bf16.mxu0 %v1428_v5 }
  0x82   :  { %1226 = vmatpush3.bf16.msra.mxu0 %v1368_v31 }
  0x83   :  { %1227 = vmatprep.subr.bf16.mxu0 %v1428_v5 }
  0x86   :  { %1228 = vmatpush3.bf16.msra.mxu0 %v1369_v32 }
  0x87   :  { %1229 = vmatprep.subr.bf16.mxu0 %v1428_v5 }
  0x8a   :  { %1230 = vmatpush3.bf16.msra.mxu0 %v1370_v33 }
  0x8b   :  { %1231 = vmatprep.subr.bf16.mxu0 %v1428_v5 }
  0x8e   :  { %1232 = vmatpush3.bf16.msra.mxu0 %v1371_v34 }
  0x8f   :  { %1233 = vmatprep.subr.bf16.mxu0 %v1428_v5 }
  0x92   :  { %1234 = vmatpush3.bf16.msra.mxu0 %v1372_v35 }
  0x93   :  { %1235 = vmatprep.subr.bf16.mxu0 %v1428_v5 }
  0x96   :  { %1236 = vmatpush3.bf16.msra.mxu0 %v1373_v36 }
  0x97   :  { %1237 = vmatprep.subr.bf16.mxu0 %v1428_v5 }
  0x9a   :  { %1238 = vmatpush3.bf16.msra.mxu0 %v1374_v37 }
  0xb1   :  { %v1014_v27 = vpop.permute.xlu0 %1013 }
 0x100   :  { %v637_v39 = vpop.f32.mrf.mxu1 }
 0x102   :  { %v639_v40 = vpop.f32.mrf.mxu1 }
 0x104   :  { %v641_v41 = vpop.f32.mrf.mxu1 }
 0x106   :  { %v642_v42 = vpop.f32.mrf.mxu1 }
 0x11d   :  { %v596_v50 = vpop.f32.mrf.mxu0 }
 0x11e   :  { %v597_v51 = vadd.f32 %v596_v50, %v155_v48 }
 0x11f   :  { %v598_v52 = vpop.f32.mrf.mxu0 }
 0x120   :  { %v638_v53 = vadd.f32 %v637_v39, %v597_v51  ;;  %v599_v54 = vadd.f32 %v598_v52, %v159_v49  ;;  %v1157_v60 = vpop.f32.mrf.mxu1 }
 0x121   :  { %v600_v55 = vpop.f32.mrf.mxu0 }
 0x122   :  { %v640_v56 = vadd.f32 %v639_v40, %v599_v54  ;;  %v724_v57 = vmax.f32 %v638_v53, 0.0  ;;  %v1158_v63 = vpop.f32.mrf.mxu1 }
 0x123   :  { %v601_v58 = vpop.f32.mrf.mxu0  ;;  %v1159_v3 = vadd.f32 %v1158_v63, %v1157_v60 }
 0x124   :  { %v725_v59 = vmax.f32 %v640_v56, 0.0  ;;  %v727_v62 = vpack.c.bf16 %v724_v57, %v724_v57  ;;  %v1160_v0 = vpop.f32.mrf.mxu1 }
 0x125   :  { %v679_v5 = vadd.f32 %v1159_v3, %v163_v4 }
 0x126   :  { %v728_v61 = vpack.c.bf16 %v725_v59, %v725_v59  ;;  %v1161_v1 = vpop.f32.mrf.mxu1 }
 0x128   :  { %961 = vmatprep.mubr.bf16.mxu1 %v728_v61 }
 0x129   :  { %962 = vmatmul.mubr.bf16.vlgmr.msra.gmra.mxu1 %v727_v62 }
 0x13d   :  { %v718_v6 = vpop.f32.mrf.mxu0 }
 0x13e   :  { %v719_v7 = vadd.f32 %v718_v6, %v679_v5 }
 0x13f   :  { %v1221_v8 = vpop.f32.mrf.mxu0 }
 0x140   :  { %v726_v9 = vmax.f32 %v719_v7, 0.0 }
 0x141   :  { %v721_v10 = vpop.f32.mrf.mxu0 }
 0x142   :  { %v729_v11 = vpack.c.bf16 %v726_v9, %v726_v9 }
 0x143   :  { %v1222_v12 = vpop.f32.mrf.mxu0 }
 0x144   :  { %1240 = vmatmul.mubr.bf16.vlgmr.msra.gmra.mxu0 %v729_v11 }
 0x1e9   :  { %v1188_v13 = vpop.f32.mrf.mxu1 }
 0x1eb   :  { %v1189_v14 = vpop.f32.mrf.mxu1 }
 0x1ec   :  { %v1190_v17 = vadd.f32 %v1189_v14, %v1188_v13 }
 0x1ed   :  { %v1191_v15 = vpop.f32.mrf.mxu1 }
 0x1ee   :  { %v964_v19 = vadd.f32 %v1190_v17, %v1115_v18 }
 0x1ef   :  { %v1192_v16 = vpop.f32.mrf.mxu1 }
 0x204   :  { %v1003_v20 = vpop.f32.mrf.mxu0 }
 0x205   :  { %v1004_v21 = vadd.f32 %v1003_v20, %v964_v19 }
 0x206   :  { %v1241_v22 = vpop.f32.mrf.mxu0 }
 0x207   :  { %v1009_v23 = vmul.f32 1.442695, %v1004_v21  ;;  %v1023_v24 = vmul.f32 %v1004_v21, %v1004_v21 }
 0x208   :  { %v1006_v25 = vpop.f32.mrf.mxu0 }
 0x209   :  { %1375 = vpow2.f32 %v1009_v23  ;;  %1025 = vrot.lane.b32.xlu0 %v1023_v24, %s1425_s7 }
 0x20a   :  { %v1242_v26 = vpop.f32.mrf.mxu0 }
 0x216   :  { %v1376_v28 = vpop.eup %1375 }
 0x217   :  { %v1016_v29 = vmul.f32 %v1376_v28, %v1014_v27  ;;  %v1022_v31 = vmul.f32 %v1376_v28, %v1376_v28 }
 0x219   :  { %1018 = vrot.lane.b32.xlu1 %v1016_v29, %s1425_s7 }
 0x27b   :  { %v1026_v30 = vpop.permute.xlu0 %1025 }
 0x27c   :  { %v1028_v32 = vadd.f32 %v1026_v30, %v1022_v31 }
 0x27e   :  { %v1029_v33 = vsub.f32 %v1028_v32, %v1004_v21 }
 0x280   :  { %v1140_v35 = vadd.f32 -0.5, %v1029_v33 }
 0x28b   :  { %v1019_v34 = vpop.permute.xlu1 %1018 }
 0x28c   :  { %v1021_v36 = vadd.f32 %v1019_v34, %v1004_v21 }
 0x28e   :  { %v1032_v37 = vsel %vm1031_vm1, %v1021_v36, %v1140_v35 }
 0x28f   :  { %1033 = vst [vmem:[%s1524_s6] sm:$0xff] %v1032_v37 }
 0x290   :  { %1038 = vsyncpa [#allocation3], 1 }
 0x291   :  { %1039 = vsyncpa [#allocation5], 1 }

</bundles_post_ra>
